<compile_context>
chip_gen: v6e
topology: v6e:2x2x1
jax: 0.10.0
libtpu: 0.0.40
codegen_flags: <defaults>
</compile_context>

<pallas_src>
import jax
import jax.numpy as jnp
import numpy as np
from jax.experimental import pallas as pl
from jax.experimental.pallas import tpu as pltpu


def _round_up(x, m):
    return ((x + m - 1) // m) * m


def _pick_tile(padded, cap):
    """Largest multiple-of-128 divisor of `padded` that is <= cap (padded % 128 == 0)."""
    t = max(128, min(cap, padded))
    t = (t // 128) * 128
    while padded % t:
        t -= 128
    return t


def _linear_single_k_kernel(x_ref, w_ref, b_ref, o_ref):
    # Single K step: no scratch, no pl.when — direct fused matmul + bias store.
    x = x_ref[...].astype(jnp.bfloat16)           # free cast if already bf16
    acc = jnp.dot(x, w_ref[...], preferred_element_type=jnp.float32)
    o_ref[...] = (acc + b_ref[...]).astype(o_ref.dtype)


def _linear_multi_k_kernel(x_ref, w_ref, b_ref, o_ref, acc_ref):
    # x_ref: (tm, tk), w_ref: (tk, tn) bf16, b_ref: (1, tn) f32,
    # o_ref: (tm, tn), acc_ref: (tm, tn) f32 VMEM scratch.
    k = pl.program_id(2)

    @pl.when(k == 0)
    def _init():
        acc_ref[...] = jnp.zeros_like(acc_ref)

    x = x_ref[...].astype(jnp.bfloat16)
    acc_ref[...] += jnp.dot(x, w_ref[...], preferred_element_type=jnp.float32)

    @pl.when(k == pl.num_programs(2) - 1)
    def _finalize():
        # Bias added exactly once, in f32, in the K-finalize branch.
        o_ref[...] = (acc_ref[...] + b_ref[...]).astype(o_ref.dtype)


def pallas_linear(x2d, w_p, b_p, *, n_out, out_dtype=jnp.float32):
    """x2d: (M, K) f32/bf16; w_p: (Kp, Np) bf16 pre-padded at init; b_p: (1, Np) f32."""
    M, K = x2d.shape
    Kp, Np = w_p.shape
    assert Kp % 128 == 0 and Np % 128 == 0 and Kp >= K and Np >= n_out

    # ---- tile selection -------------------------------------------------------
    if M >= 512:
        tm = 512
    elif M >= 256:
        tm = 256                      # fill the 256-wide MXU on v6e/v7x
    else:
        tm = _round_up(M, 16)         # bf16 sublane packing (16 x 128 vregs)
    Mp = _round_up(M, tm)

    tn = _pick_tile(Np, 512)
    tk = _pick_tile(Kp, 2048)

    # v7x megacore: make sure the parallel axes have >= 2 tiles when shapes allow.
    if (Mp // tm) * (Np // tn) == 1:
        if Np // 128 >= 2:
            tn = _pick_tile(Np, Np - 128)
        elif Mp >= 32 and tm % 32 == 0:
            tm //= 2

    grid_k = Kp // tk
    grid = (Mp // tm, Np // tn, grid_k)

    # ---- activation path: avoid materializing a padded copy when aligned -------
    if (Mp != M) or (Kp != K):
        x_in = jnp.zeros((Mp, Kp), jnp.bfloat16).at[:M, :K].set(
            x2d.astype(jnp.bfloat16))
    else:
        x_in = x2d                    # unpadded; cast to bf16 inside the kernel

    x_bytes = int(np.dtype(x_in.dtype).itemsize)
    o_bytes = int(np.dtype(out_dtype).itemsize)

    # ---- VMEM budget: 2x double-buffered inputs + acc + 2x out + bias ----------
    vmem_est = (2 * tm * tk * x_bytes + 2 * tk * tn * 2 + 2 * tn * 4
                + tm * tn * 4 + 2 * tm * tn * o_bytes)
    vmem_limit = int(min(max(2 * vmem_est, 32 * 1024 * 1024), 48 * 1024 * 1024))

    cost = pl.CostEstimate(
        flops=2 * Mp * Np * Kp,
        transcendentals=0,
        bytes_accessed=(Mp * Kp * x_bytes + Kp * Np * 2 + Np * 4
                        + Mp * Np * o_bytes),
    )

    if grid_k == 1:
        kernel = _linear_single_k_kernel
        scratch = []
    else:
        kernel = _linear_multi_k_kernel
        scratch = [pltpu.VMEM((tm, tn), jnp.float32)]

    out = pl.pallas_call(
        kernel,
        out_shape=jax.ShapeDtypeStruct((Mp, Np), out_dtype),
        grid_spec=pltpu.PrefetchScalarGridSpec(
            num_scalar_prefetch=0,
            grid=grid,
            in_specs=[
                pl.BlockSpec((tm, tk), lambda i, j, k: (i, k)),
                pl.BlockSpec((tk, tn), lambda i, j, k: (k, j)),
                pl.BlockSpec((1, tn), lambda i, j, k: (0, j)),
            ],
            out_specs=pl.BlockSpec((tm, tn), lambda i, j, k: (i, j)),
            scratch_shapes=scratch,
        ),
        compiler_params=pltpu.CompilerParams(
            dimension_semantics=("parallel", "parallel", "arbitrary"),
            vmem_limit_bytes=vmem_limit,
        ),
        cost_estimate=cost,
    )(x_in, w_p, b_p)

    if (Mp != M) or (Np != n_out):
        out = out[:M, :n_out]
    return out


class WrappedLinear:
    """The 'model' handed to ModuleWrapper: equivalent of nn.Linear(H, H)."""

    def __init__(self, hidden, key):
        kw, kb = jax.random.split(key)
        bound = 1.0 / float(hidden) ** 0.5
        # PyTorch weight is (out, in); store transposed (in, out) for x @ W.
        self.hidden = hidden
        self.weight_t = jax.random.uniform(
            kw, (hidden, hidden), jnp.float32, -bound, bound)
        self.bias = jax.random.uniform(kb, (hidden,), jnp.float32, -bound, bound)

        # One-time prep (hoisted out of the forward path): lane-dense 128-multiple
        # padding + bf16 cast of the weight, f32 padded bias row.
        Kp = _round_up(hidden, 128)
        Np = _round_up(hidden, 128)
        self.w_p = jnp.zeros((Kp, Np), jnp.bfloat16).at[:hidden, :hidden].set(
            self.weight_t.astype(jnp.bfloat16))
        self.b_p = jnp.zeros((1, Np), jnp.float32).at[0, :hidden].set(self.bias)

    def __call__(self, x):
        # x: (B, S, H) -> flatten leading dims (layout-free), run kernel, restore.
        B, S, H = x.shape
        y2d = pallas_linear(x.reshape(B * S, H), self.w_p, self.b_p,
                            n_out=self.hidden)
        return y2d.reshape(B, S, H)


class ModuleWrapper:
    """Faithful port of the PyTorch ModuleWrapper: pure delegation."""

    def __init__(self, model):
        self.module = model

    def __call__(self, inputs, **kwargs):
        return self.module(inputs, **kwargs)


if __name__ == "__main__":
    key = jax.random.PRNGKey(0)
    k_x, k_m = jax.random.split(key)

    B, S, H = 2, 8, 32
    x = jax.random.normal(k_x, (B, S, H), jnp.float32)

    model = WrappedLinear(H, k_m)
    wrapper = ModuleWrapper(model)

    # jit so pad + reshape + pallas_call compile into a single dispatch.
    fwd = jax.jit(lambda xx: wrapper(xx))
    out = jax.block_until_ready(fwd(x))

    # Reference: same bf16-input / f32-accumulate path in plain JAX.
    x2d = x.reshape(B * S, H)
    ref = (
        jnp.dot(
            x2d.astype(jnp.bfloat16),
            model.weight_t.astype(jnp.bfloat16),
            preferred_element_type=jnp.float32,
        )
        + model.bias
    ).reshape(B, S, H)

    assert out.shape == (B, S, H)
    assert jnp.allclose(out, ref, atol=1e-2, rtol=1e-2), (
        float(jnp.max(jnp.abs(out - ref)))
    )

    print("KERNEL_OK")
</pallas_src>

<mosaic_0001>
module attributes {stable_mosaic.version = 11 : i64} {
  func.func @_linear_single_k_kernel(%arg0: i32, %arg1: i32, %arg2: i32, %arg3: memref<16x128xbf16, #tpu.memory_space<vmem>>, %arg4: memref<128x128xbf16, #tpu.memory_space<vmem>>, %arg5: memref<1x128xf32, #tpu.memory_space<vmem>>, %arg6: memref<16x128xf32, #tpu.memory_space<vmem>>) attributes {dimension_semantics = [#tpu.dimension_semantics<parallel>, #tpu.dimension_semantics<parallel>, #tpu.dimension_semantics<arbitrary>], iteration_bounds = array<i64: 1, 1, 1>, scalar_prefetch = 0 : i64, scratch_operands = 0 : i64, tpu.core_type = #tpu.core_type<tc>, window_params = [{transform_indices = @transform_0, window_bounds = array<i64: 16, 128>}, {transform_indices = @transform_1, window_bounds = array<i64: 128, 128>}, {transform_indices = @transform_2, window_bounds = array<i64: 1, 128>}, {transform_indices = @transform_3, window_bounds = array<i64: 16, 128>}]} {
    %c0 = arith.constant 0 : index
    %c0_0 = arith.constant 0 : index
    %0 = vector.load %arg3[%c0, %c0_0] : memref<16x128xbf16, #tpu.memory_space<vmem>>, vector<16x128xbf16>
    %c0_1 = arith.constant 0 : index
    %c0_2 = arith.constant 0 : index
    %1 = vector.load %arg4[%c0_1, %c0_2] : memref<128x128xbf16, #tpu.memory_space<vmem>>, vector<128x128xbf16>
    %cst = arith.constant dense<0.000000e+00> : vector<16x128xf32>
    %2 = tpu.matmul %0, %1, %cst {dimension_numbers = #tpu.dot_dimension_numbers<[1], [0], [0], [1], [0, 0, 1, 1], [], []>} : vector<16x128xbf16>, vector<128x128xbf16>, vector<16x128xf32> -> vector<16x128xf32>
    %c0_3 = arith.constant 0 : index
    %c0_4 = arith.constant 0 : index
    %3 = vector.load %arg5[%c0_3, %c0_4] : memref<1x128xf32, #tpu.memory_space<vmem>>, vector<1x128xf32>
    %4 = vector.broadcast %3 : vector<1x128xf32> to vector<16x128xf32>
    %5 = arith.addf %2, %4 : vector<16x128xf32>
    %c0_5 = arith.constant 0 : index
    %c0_6 = arith.constant 0 : index
    %6 = vector.load %arg6[%c0_5, %c0_6] : memref<16x128xf32, #tpu.memory_space<vmem>>, vector<16x128xf32>
    tpu.vector_store %arg6[%c0_5, %c0_6], %5 {strides = array<i32>} : memref<16x128xf32, #tpu.memory_space<vmem>>, vector<16x128xf32>,
    return
  }
  func.func @transform_0(%arg0: i32, %arg1: i32, %arg2: i32) -> (i32, i32) {
    %c0_i32 = arith.constant 0 : i32
    return %arg0, %arg2 : i32, i32
  }
  func.func @transform_1(%arg0: i32, %arg1: i32, %arg2: i32) -> (i32, i32) {
    %c0_i32 = arith.constant 0 : i32
    return %arg2, %arg1 : i32, i32
  }
  func.func @transform_2(%arg0: i32, %arg1: i32, %arg2: i32) -> (i32, i32) {
    %c0_i32 = arith.constant 0 : i32
    %c0_i32_0 = arith.constant 0 : i32
    return %c0_i32, %arg1 : i32, i32
  }
  func.func @transform_3(%arg0: i32, %arg1: i32, %arg2: i32) -> (i32, i32) {
    %c0_i32 = arith.constant 0 : i32
    return %arg0, %arg1 : i32, i32
  }
}

</mosaic_0001>

<bundles_post_ra>
// kernel: _lambda_.1
= control target key start
LH: loop header
LB: loop body
LE: loop exit
PB: predicated region body
PF: predicated region fallthrough
CT: control target
= control target key end

     0   :  { %8 = vsyncpa [#allocation3], 0  ;;  %s231_s12 = smov [#allocation2]   ;;  %s271_s0 = inlined_call_operand.vmem [shape: bf16[16,128], index: 0, kind: input, shape index: {}]   ;;  %s272_s1 = inlined_call_operand.hbm [shape: bf16[128,128], index: 1, kind: input, shape index: {}]   ;;  %s273_s2 = inlined_call_operand.vmem [shape: f32[1,128], index: 2, kind: input, shape index: {}]   ;;  %s274_s3 = inlined_call_operand.vmem [shape: f32[16,128], index: 3, kind: output, shape index: {}]  }
   0x1   :  { %s16_s13 = sshll.u32 %s231_s12, 4  ;;  %s17_s13 = int_to_ptr.vmem [resolvable:$true] %s16_s13 }
   0x2   :  { %s217_s14 = scalar_lea.vmem %s17_s13, 1024  ;;  %p222_p1 = scmp.lt.s32.totalorder %s17_s13, %s17_s13 }
   0x3   :  { %p218_p0 = scmp.ne.s32.totalorder %s17_s13, %s217_s14  ;;  %p223_p2 = scmp.lt.s32.totalorder %s217_s14, %s217_s14 }
   0x5   :  { %p224_p3 = por %p223_p2, %p222_p1 }
   0x7   :  { %p225_p4 = pnand %p224_p3, %p218_p0 }
   0x9   :  { %228 = shalt.err (!%p225_p4)
}
   0xa   :  { %s232_s15 = smov 64   ;;  %s233_s16 = smov 4  }
   0xb   :  { %22 = dma.hbm_to_vmem [thread:$0]  %s272_s1, 1024, %s17_s13, [#allocation3], %s232_s15, %s232_s15, %s233_s16  }
   0xc   :  { %229 = dma.done.wait [#allocation3], 1024  }
   0xd   :  { %230 = vsyncadd [#allocation3], 4294966272  ;;  %v234_v0 = vmov 0.0   ;;  %vm235_vm0 = vmmov 0   ;;  %v200_v1 = vld [vmem:[#allocation2 + $0x38] sm:$0xff]   ;;  %v201_v2 = vld [vmem:[#allocation2 + $0x30] sm:$0xff]  }
   0xe   :  { %175 = vmatprep.subr.bf16.mxu0 %v234_v0  ;;  %191 = vmatprep.mubr.msk.bf16.mxu0 %vm235_vm0, %v234_v0  ;;  %v202_v3 = vld [vmem:[#allocation2 + $0x28] sm:$0xff]   ;;  %v203_v4 = vld [vmem:[#allocation2 + $0x20] sm:$0xff]   ;;  %v204_v5 = vld [vmem:[#allocation2 + $0x18] sm:$0xff]  }
   0xf   :  { %176 = vmatpush3.bf16.msra.mxu0 %v200_v1  ;;  %v205_v6 = vld [vmem:[#allocation2 + $0x10] sm:$0xff]   ;;  %v206_v7 = vld [vmem:[#allocation2 + $0x8] sm:$0xff]   ;;  %v207_v8 = vld [vmem:[#allocation2] sm:$0xff]  }
  0x10   :  { %177 = vmatprep.subr.bf16.mxu0 %v234_v0  ;;  %v208_v9 = vld [vmem:[%s271_s0] sm:$0xff]  }
  0x11   :  { %v156_v10 = vld [vmem:[%s273_s2] ss:$0 sm:$0xff] }
  0x13   :  { %178 = vmatpush3.bf16.msra.mxu0 %v201_v2 }
  0x14   :  { %179 = vmatprep.subr.bf16.mxu0 %v234_v0 }
  0x17   :  { %180 = vmatpush3.bf16.msra.mxu0 %v202_v3 }
  0x18   :  { %181 = vmatprep.subr.bf16.mxu0 %v234_v0 }
  0x1b   :  { %182 = vmatpush3.bf16.msra.mxu0 %v203_v4 }
  0x1c   :  { %183 = vmatprep.subr.bf16.mxu0 %v234_v0 }
  0x1f   :  { %184 = vmatpush3.bf16.msra.mxu0 %v204_v5 }
  0x20   :  { %185 = vmatprep.subr.bf16.mxu0 %v234_v0 }
  0x23   :  { %186 = vmatpush3.bf16.msra.mxu0 %v205_v6 }
  0x24   :  { %187 = vmatprep.subr.bf16.mxu0 %v234_v0 }
  0x27   :  { %188 = vmatpush3.bf16.msra.mxu0 %v206_v7 }
  0x28   :  { %189 = vmatprep.subr.bf16.mxu0 %v234_v0 }
  0x2b   :  { %190 = vmatpush3.bf16.msra.mxu0 %v207_v8 }
  0x2e   :  { %192 = vmatmul.mubr.bf16.vlgmr.msra.gmra.mxu0 %v208_v9 }
  0xee   :  { %v142_v11 = vpop.f32.mrf.mxu0 }
  0xef   :  { %v143_v12 = vadd.f32 %v156_v10, %v142_v11 }
  0xf0   :  { %v193_v13 = vpop.f32.mrf.mxu0 }
  0xf1   :  { %149 = vst [vmem:[%s274_s3] sm:$0xff] %v143_v12 }
  0xf2   :  { %v145_v14 = vpop.f32.mrf.mxu0 }
  0xf3   :  { %v146_v15 = vadd.f32 %v156_v10, %v145_v14 }
  0xf4   :  { %v194_v16 = vpop.f32.mrf.mxu0 }
  0xf5   :  { %150 = vst [vmem:[%s274_s3 + $0x8] sm:$0xff] %v146_v15 }
  0xf6   :  { %155 = vsyncpa [#allocation3], 1 }

</bundles_post_ra>
